<compile_context>
chip_gen: v5e
topology: v5e:2x2
jax: 0.10.0
libtpu: 0.0.40
codegen_flags: <defaults>
</compile_context>

<pallas_src>
import jax
import jax.numpy as jnp
import numpy as np
from jax.experimental import pallas as pl
from jax.experimental.pallas import tpu as pltpu

F32 = jnp.float32


def gd_loss(pred, target, pnorm=2):
    """Gradient-difference loss.  pred/target: (N, 1, H, W) float."""
    assert pred.shape == target.shape
    N, C, H, W = pred.shape
    assert C == 1, "GDLoss uses Conv2d(1, 1, ...): channel dim must be 1"
    inv_denom = 1.0 / float(N * C * H * W)

    p3 = pred.reshape(N, H, W).astype(F32)
    t3 = target.reshape(N, H, W).astype(F32)

    def kernel(p_ref, t_ref, o_ref):
        n = pl.program_id(0)

        @pl.when(n == 0)
        def _init():
            o_ref[...] = jnp.zeros_like(o_ref)

        p = p_ref[0]          # (H, W)
        t = t_ref[0]

        def term(tg, pg):     # tg / pg: |gradient| tensors of equal shape
            d = jnp.abs(tg - pg)
            m = d * d if pnorm == 2 else d ** pnorm
            return jnp.sum(m, keepdims=True)            # -> (1, 1)

        # ---- X gradient (kernel (1,2), pad (0,1)) -------------------------
        # interior columns 1..W-1 of the (W+1)-wide conv output
        sx = term(jnp.abs(t[:, 1:] - t[:, :-1]),
                  jnp.abs(p[:, 1:] - p[:, :-1]))
        # boundary columns 0 and W (zero padding): |x[:,0]| and |x[:,W-1]|
        sx += term(jnp.abs(t[:, 0:1]),     jnp.abs(p[:, 0:1]))
        sx += term(jnp.abs(t[:, W - 1:W]), jnp.abs(p[:, W - 1:W]))

        # ---- Y gradient (kernel (2,1), pad (1,0)) -------------------------
        sy = term(jnp.abs(t[1:, :] - t[:-1, :]),
                  jnp.abs(p[1:, :] - p[:-1, :]))
        sy += term(jnp.abs(t[0:1, :]),     jnp.abs(p[0:1, :]))
        sy += term(jnp.abs(t[H - 1:H, :]), jnp.abs(p[H - 1:H, :]))

        o_ref[...] += sx + sy

        @pl.when(n == pl.num_programs(0) - 1)
        def _finalize():
            o_ref[...] = o_ref[...] * inv_denom

    out = pl.pallas_call(
        kernel,
        out_shape=jax.ShapeDtypeStruct((1, 1), F32),
        grid=(N,),
        in_specs=[
            pl.BlockSpec((1, H, W), lambda n: (n, 0, 0)),
            pl.BlockSpec((1, H, W), lambda n: (n, 0, 0)),
        ],
        out_specs=pl.BlockSpec((1, 1), lambda n: (0, 0)),
        compiler_params=pltpu.CompilerParams(
            dimension_semantics=("arbitrary",)),
    )(p3, t3)
    return out[0, 0]


# Pure-JAX reference (same math as the PyTorch module), used for a correctness
# assert only.
def gd_loss_ref(pred, target, pnorm=2):
    def dx(x):
        xp = jnp.pad(x, ((0, 0), (0, 0), (0, 0), (1, 1)))
        return jnp.abs(xp[..., :, 1:] - xp[..., :, :-1])

    def dy(x):
        xp = jnp.pad(x, ((0, 0), (0, 0), (1, 1), (0, 0)))
        return jnp.abs(xp[..., :-1, :] - xp[..., 1:, :])

    gdx = jnp.abs(dx(target) - dx(pred)) ** pnorm
    gdy = jnp.abs(dy(target) - dy(pred)) ** pnorm
    n, c, h, w = target.shape
    return (jnp.sum(gdx) + jnp.sum(gdy)) / (n * c * h * w)


if __name__ == "__main__":
    key = jax.random.PRNGKey(0)
    kp, kt = jax.random.split(key)
    # GDLoss is defined for single-channel images: (N, 1, H, W)
    pred = jax.random.normal(kp, (2, 1, 16, 16), dtype=F32)
    target = jax.random.normal(kt, (2, 1, 16, 16), dtype=F32)

    loss = jax.block_until_ready(jax.jit(gd_loss)(pred, target))
    ref = jax.block_until_ready(gd_loss_ref(pred, target))

    assert loss.shape == ()
    assert bool(jnp.isfinite(loss))
    np.testing.assert_allclose(np.asarray(loss), np.asarray(ref),
                               rtol=1e-4, atol=1e-5)
    print("KERNEL_OK")
</pallas_src>

<mosaic_0001>
module attributes {stable_mosaic.version = 11 : i64} {
  func.func @kernel(%arg0: i32, %arg1: memref<1x16x16xf32, #tpu.memory_space<vmem>>, %arg2: memref<1x16x16xf32, #tpu.memory_space<vmem>>, %arg3: memref<1x1xf32, #tpu.memory_space<vmem>>) attributes {dimension_semantics = [#tpu.dimension_semantics<arbitrary>], iteration_bounds = array<i64: 2>, scalar_prefetch = 0 : i64, scratch_operands = 0 : i64, tpu.core_type = #tpu.core_type<tc>, window_params = [{transform_indices = @transform_0, window_bounds = array<i64: 1, 16, 16>}, {transform_indices = @transform_1, window_bounds = array<i64: 1, 16, 16>}, {pipeline_mode = #tpu.pipeline_mode<synchronous>, transform_indices = @transform_2, window_bounds = array<i64: 1, 1>}]} {
    %c0_i32 = arith.constant 0 : i32
    %0 = arith.cmpi eq, %arg0, %c0_i32 : i32
    %1 = arith.extui %0 : i1 to i32
    %c0_i32_0 = arith.constant 0 : i32
    %2 = arith.cmpi ne, %1, %c0_i32_0 : i32
    scf.if %2 {
      %cst_16 = arith.constant 0.000000e+00 : f32
      %98 = vector.broadcast %cst_16 : f32 to vector<1x1xf32>
      %c0_17 = arith.constant 0 : index
      %c0_18 = arith.constant 0 : index
      %99 = vector.load %arg3[%c0_17, %c0_18] : memref<1x1xf32, #tpu.memory_space<vmem>>, vector<1x1xf32>
      tpu.vector_store %arg3[%c0_17, %c0_18], %98 {strides = array<i32>} : memref<1x1xf32, #tpu.memory_space<vmem>>, vector<1x1xf32>,
    } else {
    }
    %c0 = arith.constant 0 : index
    %c0_1 = arith.constant 0 : index
    %c0_2 = arith.constant 0 : index
    %3 = vector.load %arg1[%c0, %c0_1, %c0_2] : memref<1x16x16xf32, #tpu.memory_space<vmem>>, vector<1x16x16xf32>
    %4 = vector.shape_cast %3 : vector<1x16x16xf32> to vector<16x16xf32>
    %c0_3 = arith.constant 0 : index
    %c0_4 = arith.constant 0 : index
    %c0_5 = arith.constant 0 : index
    %5 = vector.load %arg2[%c0_3, %c0_4, %c0_5] : memref<1x16x16xf32, #tpu.memory_space<vmem>>, vector<1x16x16xf32>
    %6 = vector.shape_cast %5 : vector<1x16x16xf32> to vector<16x16xf32>
    %7 = vector.extract_strided_slice %6 {offsets = [0, 1], sizes = [16, 15], strides = [1, 1]} : vector<16x16xf32> to vector<16x15xf32>
    %8 = vector.extract_strided_slice %6 {offsets = [0, 0], sizes = [16, 15], strides = [1, 1]} : vector<16x16xf32> to vector<16x15xf32>
    %9 = arith.subf %7, %8 : vector<16x15xf32>
    %10 = math.absf %9 : vector<16x15xf32>
    %11 = vector.extract_strided_slice %4 {offsets = [0, 1], sizes = [16, 15], strides = [1, 1]} : vector<16x16xf32> to vector<16x15xf32>
    %12 = vector.extract_strided_slice %4 {offsets = [0, 0], sizes = [16, 15], strides = [1, 1]} : vector<16x16xf32> to vector<16x15xf32>
    %13 = arith.subf %11, %12 : vector<16x15xf32>
    %14 = math.absf %13 : vector<16x15xf32>
    %15 = arith.subf %10, %14 : vector<16x15xf32>
    %16 = math.absf %15 : vector<16x15xf32>
    %17 = arith.mulf %16, %16 : vector<16x15xf32>
    %18 = vector.shape_cast %17 : vector<16x15xf32> to vector<1x16x15xf32>
    %cst = arith.constant dense<0.000000e+00> : vector<1xf32>
    %19 = vector.multi_reduction <add>, %18, %cst [1, 2] : vector<1x16x15xf32> to vector<1xf32>
    %20 = vector.shape_cast %19 : vector<1xf32> to vector<1x1x1xf32>
    %21 = vector.extract %20[0, 0, 0] : f32 from vector<1x1x1xf32>
    %22 = vector.broadcast %21 : f32 to vector<1x1xf32>
    %23 = vector.extract_strided_slice %6 {offsets = [0, 0], sizes = [16, 1], strides = [1, 1]} : vector<16x16xf32> to vector<16x1xf32>
    %24 = math.absf %23 : vector<16x1xf32>
    %25 = vector.extract_strided_slice %4 {offsets = [0, 0], sizes = [16, 1], strides = [1, 1]} : vector<16x16xf32> to vector<16x1xf32>
    %26 = math.absf %25 : vector<16x1xf32>
    %27 = arith.subf %24, %26 : vector<16x1xf32>
    %28 = math.absf %27 : vector<16x1xf32>
    %29 = arith.mulf %28, %28 : vector<16x1xf32>
    %30 = vector.shape_cast %29 : vector<16x1xf32> to vector<1x16x1xf32>
    %cst_6 = arith.constant dense<0.000000e+00> : vector<1xf32>
    %31 = vector.multi_reduction <add>, %30, %cst_6 [1, 2] : vector<1x16x1xf32> to vector<1xf32>
    %32 = vector.shape_cast %31 : vector<1xf32> to vector<1x1x1xf32>
    %33 = vector.extract %32[0, 0, 0] : f32 from vector<1x1x1xf32>
    %34 = vector.broadcast %33 : f32 to vector<1x1xf32>
    %35 = arith.addf %22, %34 : vector<1x1xf32>
    %36 = vector.extract_strided_slice %6 {offsets = [0, 15], sizes = [16, 1], strides = [1, 1]} : vector<16x16xf32> to vector<16x1xf32>
    %37 = math.absf %36 : vector<16x1xf32>
    %38 = vector.extract_strided_slice %4 {offsets = [0, 15], sizes = [16, 1], strides = [1, 1]} : vector<16x16xf32> to vector<16x1xf32>
    %39 = math.absf %38 : vector<16x1xf32>
    %40 = arith.subf %37, %39 : vector<16x1xf32>
    %41 = math.absf %40 : vector<16x1xf32>
    %42 = arith.mulf %41, %41 : vector<16x1xf32>
    %43 = vector.shape_cast %42 : vector<16x1xf32> to vector<1x16x1xf32>
    %cst_7 = arith.constant dense<0.000000e+00> : vector<1xf32>
    %44 = vector.multi_reduction <add>, %43, %cst_7 [1, 2] : vector<1x16x1xf32> to vector<1xf32>
    %45 = vector.shape_cast %44 : vector<1xf32> to vector<1x1x1xf32>
    %46 = vector.extract %45[0, 0, 0] : f32 from vector<1x1x1xf32>
    %47 = vector.broadcast %46 : f32 to vector<1x1xf32>
    %48 = arith.addf %35, %47 : vector<1x1xf32>
    %49 = vector.extract_strided_slice %6 {offsets = [1, 0], sizes = [15, 16], strides = [1, 1]} : vector<16x16xf32> to vector<15x16xf32>
    %50 = vector.extract_strided_slice %6 {offsets = [0, 0], sizes = [15, 16], strides = [1, 1]} : vector<16x16xf32> to vector<15x16xf32>
    %51 = arith.subf %49, %50 : vector<15x16xf32>
    %52 = math.absf %51 : vector<15x16xf32>
    %53 = vector.extract_strided_slice %4 {offsets = [1, 0], sizes = [15, 16], strides = [1, 1]} : vector<16x16xf32> to vector<15x16xf32>
    %54 = vector.extract_strided_slice %4 {offsets = [0, 0], sizes = [15, 16], strides = [1, 1]} : vector<16x16xf32> to vector<15x16xf32>
    %55 = arith.subf %53, %54 : vector<15x16xf32>
    %56 = math.absf %55 : vector<15x16xf32>
    %57 = arith.subf %52, %56 : vector<15x16xf32>
    %58 = math.absf %57 : vector<15x16xf32>
    %59 = arith.mulf %58, %58 : vector<15x16xf32>
    %60 = vector.shape_cast %59 : vector<15x16xf32> to vector<1x15x16xf32>
    %cst_8 = arith.constant dense<0.000000e+00> : vector<1xf32>
    %61 = vector.multi_reduction <add>, %60, %cst_8 [1, 2] : vector<1x15x16xf32> to vector<1xf32>
    %62 = vector.shape_cast %61 : vector<1xf32> to vector<1x1x1xf32>
    %63 = vector.extract %62[0, 0, 0] : f32 from vector<1x1x1xf32>
    %64 = vector.broadcast %63 : f32 to vector<1x1xf32>
    %65 = vector.extract_strided_slice %6 {offsets = [0, 0], sizes = [1, 16], strides = [1, 1]} : vector<16x16xf32> to vector<1x16xf32>
    %66 = math.absf %65 : vector<1x16xf32>
    %67 = vector.extract_strided_slice %4 {offsets = [0, 0], sizes = [1, 16], strides = [1, 1]} : vector<16x16xf32> to vector<1x16xf32>
    %68 = math.absf %67 : vector<1x16xf32>
    %69 = arith.subf %66, %68 : vector<1x16xf32>
    %70 = math.absf %69 : vector<1x16xf32>
    %71 = arith.mulf %70, %70 : vector<1x16xf32>
    %72 = vector.shape_cast %71 : vector<1x16xf32> to vector<1x1x16xf32>
    %cst_9 = arith.constant dense<0.000000e+00> : vector<1xf32>
    %73 = vector.multi_reduction <add>, %72, %cst_9 [1, 2] : vector<1x1x16xf32> to vector<1xf32>
    %74 = vector.shape_cast %73 : vector<1xf32> to vector<1x1x1xf32>
    %75 = vector.extract %74[0, 0, 0] : f32 from vector<1x1x1xf32>
    %76 = vector.broadcast %75 : f32 to vector<1x1xf32>
    %77 = arith.addf %64, %76 : vector<1x1xf32>
    %78 = vector.extract_strided_slice %6 {offsets = [15, 0], sizes = [1, 16], strides = [1, 1]} : vector<16x16xf32> to vector<1x16xf32>
    %79 = math.absf %78 : vector<1x16xf32>
    %80 = vector.extract_strided_slice %4 {offsets = [15, 0], sizes = [1, 16], strides = [1, 1]} : vector<16x16xf32> to vector<1x16xf32>
    %81 = math.absf %80 : vector<1x16xf32>
    %82 = arith.subf %79, %81 : vector<1x16xf32>
    %83 = math.absf %82 : vector<1x16xf32>
    %84 = arith.mulf %83, %83 : vector<1x16xf32>
    %85 = vector.shape_cast %84 : vector<1x16xf32> to vector<1x1x16xf32>
    %cst_10 = arith.constant dense<0.000000e+00> : vector<1xf32>
    %86 = vector.multi_reduction <add>, %85, %cst_10 [1, 2] : vector<1x1x16xf32> to vector<1xf32>
    %87 = vector.shape_cast %86 : vector<1xf32> to vector<1x1x1xf32>
    %88 = vector.extract %87[0, 0, 0] : f32 from vector<1x1x1xf32>
    %89 = vector.broadcast %88 : f32 to vector<1x1xf32>
    %90 = arith.addf %77, %89 : vector<1x1xf32>
    %c0_11 = arith.constant 0 : index
    %c0_12 = arith.constant 0 : index
    %91 = vector.load %arg3[%c0_11, %c0_12] : memref<1x1xf32, #tpu.memory_space<vmem>>, vector<1x1xf32>
    %92 = arith.addf %48, %90 : vector<1x1xf32>
    %93 = arith.addf %91, %92 : vector<1x1xf32>
    %c0_13 = arith.constant 0 : index
    %c0_14 = arith.constant 0 : index
    %94 = vector.load %arg3[%c0_13, %c0_14] : memref<1x1xf32, #tpu.memory_space<vmem>>, vector<1x1xf32>
    tpu.vector_store %arg3[%c0_13, %c0_14], %93 {strides = array<i32>} : memref<1x1xf32, #tpu.memory_space<vmem>>, vector<1x1xf32>,
    %c1_i32 = arith.constant 1 : i32
    %95 = arith.cmpi eq, %arg0, %c1_i32 : i32
    %96 = arith.extui %95 : i1 to i32
    %c0_i32_15 = arith.constant 0 : i32
    %97 = arith.cmpi ne, %96, %c0_i32_15 : i32
    scf.if %97 {
      %c0_16 = arith.constant 0 : index
      %c0_17 = arith.constant 0 : index
      %98 = vector.load %arg3[%c0_16, %c0_17] : memref<1x1xf32, #tpu.memory_space<vmem>>, vector<1x1xf32>
      %cst_18 = arith.constant 0.001953125 : f32
      %99 = vector.broadcast %cst_18 : f32 to vector<1x1xf32>
      %100 = arith.mulf %98, %99 : vector<1x1xf32>
      %c0_19 = arith.constant 0 : index
      %c0_20 = arith.constant 0 : index
      %101 = vector.load %arg3[%c0_19, %c0_20] : memref<1x1xf32, #tpu.memory_space<vmem>>, vector<1x1xf32>
      tpu.vector_store %arg3[%c0_19, %c0_20], %100 {strides = array<i32>} : memref<1x1xf32, #tpu.memory_space<vmem>>, vector<1x1xf32>,
    } else {
    }
    return
  }
  func.func @transform_0(%arg0: i32) -> (i32, i32, i32) {
    %c0_i32 = arith.constant 0 : i32
    %c0_i32_0 = arith.constant 0 : i32
    %c0_i32_1 = arith.constant 0 : i32
    return %arg0, %c0_i32, %c0_i32_0 : i32, i32, i32
  }
  func.func @transform_1(%arg0: i32) -> (i32, i32, i32) {
    %c0_i32 = arith.constant 0 : i32
    %c0_i32_0 = arith.constant 0 : i32
    %c0_i32_1 = arith.constant 0 : i32
    return %arg0, %c0_i32, %c0_i32_0 : i32, i32, i32
  }
  func.func @transform_2(%arg0: i32) -> (i32, i32) {
    %c0_i32 = arith.constant 0 : i32
    %c0_i32_0 = arith.constant 0 : i32
    %c0_i32_1 = arith.constant 0 : i32
    return %c0_i32, %c0_i32_0 : i32, i32
  }
}

</mosaic_0001>

<bundles_post_ra>
// kernel: gd_loss.1
= control target key start
LH: loop header
LB: loop body
LE: loop exit
PB: predicated region body
PF: predicated region fallthrough
CT: control target
= control target key end

     0   :  { %7 = vsyncpa [#allocation3], 0  ;;  %s858_s0 = inlined_call_operand.hbm [shape: f32[2,16,16], index: 0, kind: input, shape index: {}]   ;;  %s859_s1 = inlined_call_operand.hbm [shape: f32[2,16,16], index: 1, kind: input, shape index: {}]   ;;  %s860_s2 = inlined_call_operand.hbm [shape: f32[1,1], index: 2, kind: output, shape index: {}]  }
   0x1   :  { %9 = vsyncpa [#allocation3 + $0x1], 0 }
   0x2   :  { %10 = vsyncpa [#allocation6], 0 }
   0x3   :  { %12 = vsyncpa [#allocation6 + $0x1], 0 }
   0x4   :  { %13 = vsyncpa [#allocation4], 0  ;;  %s715_s9 = smov 0   ;;  %s717_s10 = smov 0  }
   0x5   :  { %s719_s11 = smov 0   ;;  %s721_s12 = smov 0  }
   0x6 LB: > { %s734_s13 = sadd.s32 4294967295, %s691_s12   ;;  %s737_s14 = sadd.s32 1, %s691_s12   ;;  %s691_s12 = sphi %s721_s12, %s868_s12   ;;  %s687_s11 = sphi %s719_s11, %s867_s11   ;;  %s683_s10 = sphi %s717_s10, %s866_s10   ;;  %s679_s9 = sphi %s715_s9, %s865_s9  }
   0x7   : > { %s23_s15 = ssub.s32 %s691_s12, %s737_s14  ;;  %s26_s16 = sadd.s32 1, %s687_s11 }
   0x8   : > { %p24_p0 = scmp.eq.s32.totalorder %s23_s15, 0  ;;  %p33_p1 = scmp.ne.s32.totalorder %s687_s11, %s683_s10 }
   0x9   : > { %p34_p2 = scmp.eq.s32.totalorder %s691_s12, 0  ;;  %p39_p3 = scmp.ne.s32.totalorder %s683_s10, %s679_s9 }
   0xa   : > { %s747_s17 = scalar_select %p24_p0, %s687_s11, %s26_s16  }
   0xb   : > { %p749_p4 = por %p34_p2, %p33_p1  ;;  %p40_p5 = scmp.eq.s32.totalorder %s734_s13, 0 }
   0xc   : > { %p519_p6 = scmp.lt.s32.totalorder %s691_s12, 2  ;;  %s760_s20 = sand.u32 1, %s687_s11  }
   0xd   : > { %p755_p7 = por %p40_p5, %p39_p3  ;;  %s475_s21 = sshll.u32 %s760_s20, 4 }
   0xe   : > { %s490_s22 = sshll.u32 %s691_s12, 4  ;;  %s114_s26 = scalar_lea.vmem [#allocation2], %s475_s21 }
   0xf   : > { %s119_s25 = scalar_lea.hbm %s858_s0, %s490_s22  ;;  %s122_s27 = sshll.u32 %s114_s26, 4  ;;  %s123_s27 = int_to_ptr.vmem [resolvable:$true] %s122_s27 }
  0x10   : > { %s120_s28 = sshll.u32 %s119_s25, 4  ;;  %p773_p8 = pnand %p519_p6, %p749_p4  ;;  %s121_s28 = int_to_ptr.hbm [resolvable:$true] %s120_s28 }
  0x11   : > { %p481_p9 = scmp.ge.s32.totalorder %s691_s12, 1  ;;  %s111_s30 = scalar_lea.sflag [#allocation3], %s760_s20 }
  0x12   : > { %s561_s3 = sshra.s32 %s121_s28, 4  ;;  %p565_p11 = pneg %p773_p8  ;;  %s562_s3 = int_to_ptr.hbm [resolvable:$true] %s561_s3 }
  0x13   : > { %s563_s4 = scalar_lea.hbm %s562_s3, 16  ;;  %s568_s7 = scalar_lea.hbm %s858_s0, 32 }
  0x14   : > { %p564_p10 = scmp.ne.s32.totalorder %s562_s3, %s563_s4  ;;  %p569_p0 = scmp.lt.s32.totalorder %s562_s3, %s858_s0 }
  0x15   : > { %p570_p1 = scmp.lt.s32.totalorder %s568_s7, %s563_s4 }
  0x16   : > { %p566_p12 = pnand %p565_p11, %p564_p10 }
  0x17   : > { %p571_p2 = por %p570_p1, %p569_p0 }
  0x18   : > { %p567_p13 = pneg %p566_p12 }
  0x1a   : > { %p572_p3 = pnand %p571_p2, %p567_p13 }
  0x1c   : > { %575 = shalt.err (!%p572_p3)
}
  0x1d   : > { %s693_s15 = smov 128   ;;  %s694_s16 = smov 8  }
  0x1e   : > { %515 = dma.hbm_to_vmem [thread:$0]  (!%p773_p8), %s121_s28, 256, %s123_s27, %s111_s30, %s693_s15, %s693_s15, %s694_s16  }
  0x1f   : > { %p152_p4 = scmp.lt.s32.totalorder %s691_s12, 3  ;;  %s141_s24 = scalar_lea.hbm %s859_s1, %s490_s22 }
  0x20   : > { %s142_s26 = sshll.u32 %s141_s24, 4  ;;  %s136_s3 = scalar_lea.vmem [#allocation5], %s475_s21  ;;  %s143_s26 = int_to_ptr.hbm [resolvable:$true] %s142_s26 }
  0x21   : > { %p800_p5 = pnand %p481_p9, %p152_p4  ;;  %s144_s4 = sshll.u32 %s136_s3, 4  ;;  %s145_s4 = int_to_ptr.vmem [resolvable:$true] %s144_s4 }
  0x22   : > { %s133_s5 = scalar_lea.sflag [#allocation6], %s760_s20  ;;  %s591_s6 = sshra.s32 %s143_s26, 4  ;;  %s592_s6 = int_to_ptr.hbm [resolvable:$true] %s591_s6 }
  0x23   : > { %s593_s27 = scalar_lea.hbm %s592_s6, 16  ;;  %s598_s28 = scalar_lea.hbm %s859_s1, 32 }
  0x24   : > { %p594_p6 = scmp.ne.s32.totalorder %s592_s6, %s593_s27  ;;  %p599_p9 = scmp.lt.s32.totalorder %s592_s6, %s859_s1 }
  0x25   : > { %p600_p13 = scmp.lt.s32.totalorder %s598_s28, %s593_s27 }
  0x26   : > { %p596_p10 = pnand %p594_p6, %p565_p11 }
  0x27   : > { %p601_p0 = por %p600_p13, %p599_p9 }
  0x28   : > { %p597_p12 = pneg %p596_p10 }
  0x2a   : > { %p602_p1 = pnand %p601_p0, %p597_p12 }
  0x2c   : > { %605 = shalt.err (!%p602_p1)
}
  0x2d   : > { %518 = dma.hbm_to_vmem [thread:$0]  (!%p773_p8), %s143_s26, 256, %s145_s4, %s133_s5, %s693_s15, %s693_s15, %s694_s16  }
  0x2e   : > { %156 = sbr.rel (%p800_p5) target bundleno = 503 (0x1f7), region = 28  ;;  %s158_s20 = sand.u32 (!%p800_p5), 1, %s683_s10  }
  0x2f   : > { %s482_s21 = sshll.u32 (!%p800_p5), %s158_s20, 4  ;;  %s159_s8 = scalar_lea.sflag (!%p800_p5), [#allocation3], %s158_s20 }
  0x30   : > { %s162_s9 = scalar_lea.vmem (!%p800_p5), [#allocation2], %s482_s21 }
  0x33   : > { %666 = dma.done.wait (%p755_p7), %s159_s8, 256  }
  0x34   : > { %668 = vsyncadd (%p755_p7), %s159_s8, 4294967040  ;;  %s169_s18 = scalar_lea.sflag [#allocation6], %s158_s20  ;;  %s172_s23 = scalar_lea.vmem [#allocation5], %s482_s21 }
  0x35   : > { %670 = dma.done.wait (%p755_p7), %s169_s18, 256  }
  0x36   : > { %672 = vsyncadd (%p755_p7), %s169_s18, 4294967040  ;;  %p484_p8 = scmp.ne.s32.totalorder %s734_s13, 0 }
  0x38   : > { %197 = sbr.rel (%p484_p8) target bundleno = 63 (0x3f), region = 40 }
  0x3d   : > { %vm198_vm0 = vcmask 0   ;;  %v695_v0 = vmov 0.0  }
  0x3e   : > { %199 = vst.msk [vmem:[#allocation7] sm:$0x1] %vm198_vm0, %v695_v0 }
  0x3f PF: > { %v202_v1 = vld [vmem:[%s172_s23] sm:$0xff]  ;;  %v203_v3 = vld [vmem:[%s172_s23 + $0x8] sm:$0xff]  ;;  %s696_s29 = smov 1   ;;  %s697_s19 = smov 113   ;;  %vm303_vm1 = vcmask 1040384   ;;  %vm330_vm2 = vcmask 1046528  }
  0x40   : > { %v200_v2 = vld [vmem:[%s162_s9] sm:$0xff]  ;;  %206 = vrot.lane.b32.xlu0 %v202_v1, %s696_s29  ;;  %v201_v4 = vld [vmem:[%s162_s9 + $0x8] sm:$0xff]  ;;  %v257_v5 = vand.u32 2147483647, %v203_v3  ;;  %v256_v7 = vand.u32 2147483647, %v202_v1 }
  0x41   : > { %218 = vrot.lane.b32.xlu1 %v200_v2, %s696_s29  ;;  %v259_v6 = vand.u32 2147483647, %v201_v4  ;;  %v258_v8 = vand.u32 2147483647, %v200_v2  ;;  %s698_s15 = smov 127   ;;  %v304_v33 = vrot.slane %v202_v1, 7 }
  0x42   : > { %v313_v34 = vrot.slane %v200_v2, 7  ;;  %v305_v35 = vrot.slane %v203_v3, 7  ;;  %v314_v36 = vrot.slane %v201_v4, 7  ;;  %vm336_vm3 = vcmask 130048   ;;  %p485_p7 = scmp.ne.s32.totalorder %s734_s13, 1 }
  0x43   : > { %v261_v9 = vsub.f32 %v257_v5, %v259_v6  ;;  %v260_v10 = vsub.f32 %v256_v7, %v258_v8  ;;  %v309_v39 = vsub.f32 %v202_v1, %v304_v33  ;;  %vm338_vm4 = vcmask 129024  }
  0x44   : > { %v306_v37 = vsel %vm303_vm1, %v304_v33, %v305_v35  ;;  %v315_v38 = vsel %vm303_vm1, %v313_v34, %v314_v36  ;;  %v318_v41 = vsub.f32 %v200_v2, %v313_v34  ;;  %vm266_vm5 = vcmask 7168  }
  0x45   : > { %v263_v11 = vand.u32 2147483647, %v261_v9  ;;  %v262_v12 = vand.u32 2147483647, %v260_v10  ;;  %v310_v40 = vsub.f32 %v203_v3, %v306_v37  ;;  %v319_v42 = vsub.f32 %v201_v4, %v315_v38 }
  0x46   : > { %v311_v43 = vand.u32 2147483647, %v309_v39  ;;  %v320_v45 = vand.u32 2147483647, %v318_v41  ;;  %vm351_vm6 = vcmask 122880   ;;  %vm242_vm7 = vcmask 121856  }
  0x47   : > { %v830_v13 = vmul.f32 %v263_v11, %v263_v11  ;;  %v832_v14 = vmul.f32 %v262_v12, %v262_v12  ;;  %v312_v44 = vand.u32 2147483647, %v310_v40  ;;  %v321_v46 = vand.u32 2147483647, %v319_v42 }
  0x48   : > { %208 = vrot.lane.b32.xlu0 %v203_v3, %s696_s29  ;;  %v322_v47 = vsub.f32 %v311_v43, %v320_v45  ;;  %vm381_vm8 = vcmask 0  }
  0x49   : > { %220 = vrot.lane.b32.xlu1 %v201_v4, %s696_s29  ;;  %v323_v48 = vsub.f32 %v312_v44, %v321_v46  ;;  %v267_v59 = vsel %vm266_vm5, %v832_v14, 0.0  ;;  %v268_v60 = vsel %vm266_vm5, %v830_v13, 0.0  ;;  %v352_v10 = vsel %vm351_vm6, %v832_v14, 0.0 }
  0x4a   : > { %v324_v49 = vand.u32 2147483647, %v322_v47  ;;  %v269_v61 = vadd.f32 %v268_v60, %v267_v59 }
  0x4b   : > { %v325_v50 = vand.u32 2147483647, %v323_v48 }
  0x4c   : > { %v326_v51 = vmul.f32 %v324_v49, %v324_v49 }
  0x4d   : > { %v327_v52 = vmul.f32 %v325_v50, %v325_v50 }
  0x4e   : > { %v331_v53 = vrot.slane %v326_v51, 1 }
  0x4f   : > { %v332_v54 = vrot.slane %v327_v52, 1 }
  0x50   : > { %283 = vrot.lane.b32.xlu0 %v832_v14, %s697_s19 }
  0x51   : > { %285 = vrot.lane.b32.xlu1 %v830_v13, %s697_s19  ;;  %v333_v55 = vsel %vm330_vm2, %v331_v53, %v332_v54  ;;  %v339_v57 = vsel %vm338_vm4, %v332_v54, 0.0 }
  0x52   : > { %v337_v56 = vsel %vm336_vm3, %v333_v55, 0.0 }
  0x53   : > { %v340_v58 = vadd.f32 %v339_v57, %v337_v56 }
  0x7a   : > { %270 = vadd.xlane.f32.xlu0 %v269_v61 }
  0xb2   : > { %v207_v15 = vpop.permute.xlu0 %206 }
  0xb3   : > { %v219_v16 = vpop.permute.xlu1 %218  ;;  %v212_v17 = vsub.f32 %v202_v1, %v207_v15 }
  0xb4   : > { %v224_v18 = vsub.f32 %v200_v2, %v219_v16 }
  0xb5   : > { %v214_v19 = vand.u32 2147483647, %v212_v17 }
  0xb6   : > { %v226_v20 = vand.u32 2147483647, %v224_v18 }
  0xb8   : > { %v228_v21 = vsub.f32 %v214_v19, %v226_v20 }
  0xba   : > { %v230_v22 = vand.u32 2147483647, %v228_v21  ;;  %v209_v23 = vpop.permute.xlu0 %208 }
  0xbb   : > { %v221_v24 = vpop.permute.xlu1 %220  ;;  %v213_v25 = vsub.f32 %v203_v3, %v209_v23  ;;  %v364_v3 = vrot.slane %v830_v13, 7 }
  0xbc   : > { %v225_v26 = vsub.f32 %v201_v4, %v221_v24  ;;  %v232_v27 = vmul.f32 %v230_v22, %v230_v22 }
  0xbd   : > { %v215_v28 = vand.u32 2147483647, %v213_v25  ;;  %v366_v4 = vsel %vm351_vm6, %v364_v3, 0.0 }
  0xbe   : > { %v227_v29 = vand.u32 2147483647, %v225_v26  ;;  %236 = vrot.lane.b32.xlu2 %v232_v27, %s698_s15  ;;  %367 = vadd.xlane.f32.xlu0 %v366_v4 }
  0xc0   : > { %v229_v30 = vsub.f32 %v215_v28, %v227_v29 }
  0xc2   : > { %v231_v31 = vand.u32 2147483647, %v229_v30  ;;  %v284_v63 = vpop.permute.xlu0 %283 }
  0xc3   : > { %v286_v62 = vpop.permute.xlu1 %285  ;;  %v289_v1 = vsel %vm266_vm5, %v284_v63, 0.0  ;;  %v378_v63 = vld [vmem:[#allocation7] sm:$0x1] }
  0xc4   : > { %v233_v32 = vmul.f32 %v231_v31, %v231_v31  ;;  %v290_v0 = vsel %vm266_vm5, %v286_v62, 0.0 }
  0xc5   : > { %v291_v2 = vadd.f32 %v290_v0, %v289_v1 }
  0xc6   : > { %238 = vrot.lane.b32.xlu2 %v233_v32, %s698_s15 }
  0xc7   : > { %292 = vadd.xlane.f32.xlu1 %v291_v2 }
  0xed   : > { %v271_v11 = vpop.xlane.xlu0 %270 }
  0xee   : > { %v272_v17 = vrot.slane %v271_v11, 4 }
  0xef   : > { %341 = vadd.xlane.f32.xlu2 %v340_v58 }
  0xf0   : > { %v273_v13 = vadd.f32 %v272_v17, %v271_v11 }
  0xf2   : > { %v274_v23 = vrot.slane %v273_v13, 2 }
  0xf4   : > { %v275_v30 = vadd.f32 %v274_v23, %v273_v13 }
  0xf6   : > { %v276_v37 = vrot.slane %v275_v30, 1 }
  0xf8   : > { %v277_v45 = vadd.f32 %v276_v37, %v275_v30 }
 0x118   : > { %v237_v5 = vpop.permute.xlu2 %236 }
 0x119   : > { %v243_v7 = vsel %vm242_vm7, %v237_v5, 0.0 }
 0x120   : > { %v239_v6 = vpop.permute.xlu2 %238 }
 0x121   : > { %v244_v8 = vsel %vm242_vm7, %v239_v6, 0.0 }
 0x122   : > { %v245_v9 = vadd.f32 %v244_v8, %v243_v7 }
 0x124   : > { %246 = vadd.xlane.f32.xlu2 %v245_v9 }
 0x12c   : > { %353 = vadd.xlane.f32.xlu2 %v352_v10 }
 0x131   : > { %v368_v20 = vpop.xlane.xlu0 %367 }
 0x132   : > { %v369_v25 = vrot.slane %v368_v20, 4 }
 0x134   : > { %v370_v14 = vadd.f32 %v369_v25, %v368_v20 }
 0x136   : > { %v371_v35 = vrot.slane %v370_v14, 2 }
 0x138   : > { %v372_v44 = vadd.f32 %v371_v35, %v370_v14 }
 0x13a   : > { %v293_v12 = vpop.xlane.xlu1 %292  ;;  %v373_v49 = vrot.slane %v372_v44, 1 }
 0x13b   : > { %v294_v16 = vrot.slane %v293_v12, 4 }
 0x13c   : > { %v374_v52 = vadd.f32 %v373_v49, %v372_v44 }
 0x13d   : > { %v295_v19 = vadd.f32 %v294_v16, %v293_v12 }
 0x13f   : > { %v296_v22 = vrot.slane %v295_v19, 2 }
 0x141   : > { %v297_v29 = vadd.f32 %v296_v22, %v295_v19 }
 0x143   : > { %v298_v34 = vrot.slane %v297_v29, 1 }
 0x145   : > { %v299_v43 = vadd.f32 %v298_v34, %v297_v29 }
 0x162   : > { %v342_v15 = vpop.xlane.xlu2 %341 }
 0x163   : > { %v343_v18 = vrot.slane %v342_v15, 4 }
 0x165   : > { %v344_v21 = vadd.f32 %v343_v18, %v342_v15 }
 0x167   : > { %v345_v27 = vrot.slane %v344_v21, 2 }
 0x169   : > { %v346_v32 = vadd.f32 %v345_v27, %v344_v21 }
 0x16b   : > { %v347_v40 = vrot.slane %v346_v32, 1 }
 0x16d   : > { %v348_v47 = vadd.f32 %v347_v40, %v346_v32 }
 0x197   : > { %v247_v24 = vpop.xlane.xlu2 %246 }
 0x198   : > { %v248_v26 = vrot.slane %v247_v24, 4 }
 0x19a   : > { %v249_v28 = vadd.f32 %v248_v26, %v247_v24 }
 0x19c   : > { %v250_v31 = vrot.slane %v249_v28, 2 }
 0x19e   : > { %v251_v33 = vadd.f32 %v250_v31, %v249_v28 }
 0x19f   : > { %v354_v36 = vpop.xlane.xlu2 %353 }
 0x1a0   : > { %v355_v38 = vrot.slane %v354_v36, 4  ;;  %v252_v39 = vrot.slane %v251_v33, 1 }
 0x1a2   : > { %v356_v41 = vadd.f32 %v355_v38, %v354_v36  ;;  %v253_v42 = vadd.f32 %v252_v39, %v251_v33 }
 0x1a4   : > { %v357_v46 = vrot.slane %v356_v41, 2  ;;  %492 = vpush %v253_v42 }
 0x1a5   : > { %494 = vpush %v277_v45 }
 0x1a6   : > { %v358_v48 = vadd.f32 %v357_v46, %v356_v41  ;;  %496 = vpush %v299_v43 }
 0x1a7   : > { %498 = vpush %v348_v47 }
 0x1a8   : > { %v359_v50 = vrot.slane %v358_v48, 1 }
 0x1aa   : > { %v360_v51 = vadd.f32 %v359_v50, %v358_v48 }
 0x1ac   : > { %500 = vpush %v360_v51 }
 0x1ad   : > { %502 = vpush %v374_v52 }
 0x1d5   : > { %s493_s16 = spop %492 }
 0x1d6   : > { %s495_s24 = spop %494  ;;  %v255_v53 = vstv %s493_s16 }
 0x1d7   : > { %s497_s25 = spop %496  ;;  %v279_v54 = vstv %s495_s24 }
 0x1d8   : > { %s499_s26 = spop %498  ;;  %v280_v55 = vadd.f32 %v279_v54, %v255_v53  ;;  %v301_v56 = vstv %s497_s25 }
 0x1d9   : > { %v350_v57 = vstv %s499_s26 }
 0x1da   : > { %v302_v61 = vadd.f32 %v301_v56, %v280_v55 }
 0x1dd   : > { %s501_s3 = spop %500 }
 0x1de   : > { %v362_v58 = vstv %s501_s3  ;;  %s503_s4 = spop %502 }
 0x1df   : > { %v363_v59 = vadd.f32 %v362_v58, %v350_v57  ;;  %v376_v60 = vstv %s503_s4 }
 0x1e1   : > { %v377_v62 = vadd.f32 %v376_v60, %v363_v59 }
 0x1e3   : > { %v379_v0 = vadd.f32 %v377_v62, %v302_v61  ;;  %386 = sbr.rel (%p485_p7) target bundleno = 498 (0x1f2), region = 44 }
 0x1e5   : > { %v380_v1 = vadd.f32 %v379_v0, %v378_v63 }
 0x1e7   : > { %382 = vst.msk [vmem:[#allocation7] sm:$0x1] %vm381_vm8, %v380_v1 }
 0x1ee   : > { %v387_v2 = vld [vmem:[#allocation7] sm:$0x1] }
 0x1ef   : > { %v388_v3 = vmul.f32 0.001953125, %v387_v2 }
 0x1f1   : > { %389 = vst.msk [vmem:[#allocation7] sm:$0x1] %vm381_vm8, %v388_v3 }
 0x1f2 PF: > { %p520_p11 = scmp.eq.s32.totalorder %s734_s13, 1  ;;  %s699_s5 = smov [#allocation7]  }
 0x1f3   : > { %s396_s6 = sshll.u32 %s699_s5, 4  ;;  %s398_s22 = sshll.u32 %s860_s2, 4  ;;  %s397_s6 = int_to_ptr.vmem [resolvable:$true] %s396_s6  ;;  %s399_s22 = int_to_ptr.hbm [resolvable:$true] %s398_s22 }
 0x1f4   : > { %509 = dma.vmem_to_hbm [thread:$0]  (%p520_p11), %s397_s6, 16, %s399_s22, [#allocation4]  }
 0x1f5   : > { %674 = dma.done.wait (%p520_p11), [#allocation4], 16  }
 0x1f6   : > { %676 = vsyncadd (%p520_p11), [#allocation4], 4294967280 }
 0x1f7 PF: > { %p16_p2 = scmp.ge.s32.totalorder %s737_s14, 4   ;;  %s865_s9 = smov %s683_s10 }
 0x1f8   : > { %s866_s10 = smov %s687_s11  ;;  %s867_s11 = smov %s747_s17 }
 0x1f9   : > { %s868_s12 = smov %s737_s14  ;;  %18 = sbr.rel (!%p16_p2) target bundleno = 6 (0x6), region = 86 }
 0x1fe   :  { %412 = vsyncpa [#allocation3], 1 }
 0x1ff   :  { %414 = vsyncpa [#allocation3 + $0x1], 1 }
 0x200   :  { %415 = vsyncpa [#allocation6], 1 }
 0x201   :  { %417 = vsyncpa [#allocation6 + $0x1], 1 }
 0x202   :  { %418 = vsyncpa [#allocation4], 1 }
 0x203   :  { %420 = vsyncpa [#allocation4 + $0x1], 1 }

</bundles_post_ra>
